<compile_context>
chip_gen: v7x
topology: tpu7x:2x2x1
jax: 0.10.0
libtpu: 0.0.40
codegen_flags: <defaults>
</compile_context>

<pallas_src>
import jax
import jax.numpy as jnp
from jax import lax
from jax.experimental import pallas as pl
from jax.experimental.pallas import tpu as pltpu

BN_EPS = 1e-5


def _round_up(x, m):
    return (x + m - 1) // m * m


def _vmem_budget_bytes():
    """Scoped-VMEM limit per generation (conservative on v7x's 64 MiB)."""
    try:
        cap = int(pltpu.get_tpu_info().vmem_capacity_bytes)
    except Exception:  # pragma: no cover - be robust if the query fails
        cap = 64 * 1024 * 1024
    if cap >= 128 * 1024 * 1024:       # v5e / v6e: raise well above 16/32 MiB defaults
        return 96 * 1024 * 1024
    return 48 * 1024 * 1024            # v7x: leave headroom below 64 MiB physical


def _max_tile_cols(c_in, c_half, vmem_limit, itemsize):
    """Largest row-tile (columns of M) whose double-buffered x+y tiles fit."""
    cin_p = max(_round_up(c_in, 16), 16)      # sublane packing for narrow dtypes
    ch_p = max(_round_up(c_half, 16), 16)
    per_col = 2 * (cin_p + ch_p) * itemsize   # 2 pipeline buffers each for x and y
    tm = (vmem_limit // 2) // per_col         # keep half the limit as headroom
    return max(128, min(4096, tm // 128 * 128))


def _pick_tm(m, tm_max):
    """Pick a lane-aligned tile and (minimally) padded M so the grid is exact."""
    m128 = _round_up(m, 128)
    q = m128 // 128
    tm_cap = max(128, min(tm_max, m128))
    for d in range(tm_cap // 128, 0, -1):
        if q % d == 0:
            tm = d * 128
            if tm * 4 >= tm_cap or tm >= 1024:   # divisor tile big enough -> <=127 pad cols
                return tm, m128
            break
    return tm_cap, _round_up(m, tm_cap)          # else pad up to a big tile


def _conv_stats_kernel(x_ref, w_ref, y_ref, sum_ref, sq_ref):
    """relu -> 1x1-conv matmul (MXU, f32 acc) -> per-channel BN partial sums.

    x_ref  : (1, C_in, TM)    stride-2 samples of one phase (lane-dense M)
    w_ref  : (C_half, C_in)   shared 1x1 conv weight
    y_ref  : (1, C_half, TM)  pre-BN conv output tile (storage dtype)
    sum_ref: (1, C_half, 1)   resident accumulator of sum(y)   (f32)
    sq_ref : (1, C_half, 1)   resident accumulator of sum(y*y) (f32)
    """
    m = pl.program_id(1)

    @pl.when(m == 0)
    def _():
        sum_ref[...] = jnp.zeros_like(sum_ref)
        sq_ref[...] = jnp.zeros_like(sq_ref)

    x = jnp.maximum(x_ref[0], 0)                                      # ReLU (VPU)
    y = jnp.dot(w_ref[...], x, preferred_element_type=jnp.float32)    # MXU, f32 acc
    y_ref[0] = y.astype(y_ref.dtype)
    # Stats from the f32 matmul result (BEFORE any bf16 downcast); lane
    # reductions go to the XLU slot which is free under the DMA bottleneck.
    sum_ref[0] += jnp.sum(y, axis=1, keepdims=True)
    sq_ref[0] += jnp.sum(y * y, axis=1, keepdims=True)


def factorized_reduce2(x_nchw, conv_w, gamma, beta, *, storage_dtype=jnp.bfloat16):
    """conv_w: (C_out//2, C_in, 1, 1) OIHW; gamma/beta: (C_out,). Returns f32 NCHW."""
    N, C_in, H, W = x_nchw.shape
    assert H % 2 == 0 and W % 2 == 0, "torch.cat needs equal spatial dims"
    C_half = conv_w.shape[0]
    assert conv_w.shape == (C_half, C_in, 1, 1)
    C_out = 2 * C_half
    Ho, Wo = H // 2, W // 2
    M = N * Ho * Wo

    itemsize = jnp.dtype(storage_dtype).itemsize
    vmem_limit = _vmem_budget_bytes()
    tm_max = _max_tile_cols(C_in, C_half, vmem_limit, itemsize)
    tm, m_pad = _pick_tm(M, tm_max)
    n_m = m_pad // tm

    def phase_cols(x_phase):
        # Strided slice BEFORE the layout change -> only half the activations
        # move; slice + transpose + convert (+ tiny pad) fuse into one XLA copy
        # per phase, and the minor dims (Ho, Wo) stay minor so it is cheap.
        r = jnp.transpose(x_phase, (1, 0, 2, 3)).reshape(C_in, M).astype(storage_dtype)
        if m_pad != M:
            # zero cols: relu(0)=0 -> zero conv output -> contribute 0 to BN sums
            r = jnp.pad(r, ((0, 0), (0, m_pad - M)))
        return r

    # (2, C_in, m_pad): phase 0 = conv(x) sample points, phase 1 = conv(x[:,:,1:,1:]).
    # The concat sits on the major axis so XLA writes each phase's fusion
    # directly into its half of the buffer.
    x_stacked = jnp.stack(
        [phase_cols(x_nchw[:, :, 0::2, 0::2]),
         phase_cols(x_nchw[:, :, 1::2, 1::2])], axis=0)

    w2d = conv_w.reshape(C_half, C_in).astype(storage_dtype)          # (C_half, C_in)

    flops = 2 * 2 * m_pad * C_in * C_half
    bytes_accessed = (itemsize * (2 * m_pad * C_in + C_half * C_in + 2 * m_pad * C_half)
                      + 4 * 4 * C_half)

    y, s1, s2 = pl.pallas_call(
        _conv_stats_kernel,
        out_shape=(
            jax.ShapeDtypeStruct((2, C_half, m_pad), storage_dtype),
            jax.ShapeDtypeStruct((2, C_half, 1), jnp.float32),
            jax.ShapeDtypeStruct((2, C_half, 1), jnp.float32),
        ),
        grid_spec=pltpu.PrefetchScalarGridSpec(
            num_scalar_prefetch=0,
            grid=(2, n_m),
            in_specs=[
                pl.BlockSpec((1, C_in, tm), lambda p, m: (p, 0, m)),
                pl.BlockSpec((C_half, C_in), lambda p, m: (0, 0)),
            ],
            out_specs=(
                pl.BlockSpec((1, C_half, tm), lambda p, m: (p, 0, m)),
                pl.BlockSpec((1, C_half, 1), lambda p, m: (p, 0, 0)),
                pl.BlockSpec((1, C_half, 1), lambda p, m: (p, 0, 0)),
            ),
        ),
        compiler_params=pltpu.CompilerParams(
            dimension_semantics=("parallel", "arbitrary"),   # phase -> one per TC on v7x
            vmem_limit_bytes=vmem_limit,
        ),
        cost_estimate=pl.CostEstimate(
            flops=flops, transcendentals=0, bytes_accessed=bytes_accessed),
    )(x_stacked, w2d)

    # ---- finalize batch stats, fold BN into per-channel scale/shift (f32) ----
    mean = s1[:, :, 0] / M                                  # (2, C_half), biased (train)
    var = s2[:, :, 0] / M - mean * mean
    inv = lax.rsqrt(var + BN_EPS)
    g2 = gamma.astype(jnp.float32).reshape(2, C_half)
    b2 = beta.astype(jnp.float32).reshape(2, C_half)
    scale = (g2 * inv)[:, :, None]                          # (2, C_half, 1)
    shift = (b2 - mean * g2 * inv)[:, :, None]

    # ---- fused BN affine + layout restore (single XLA fusion/copy) -----------
    out = y[:, :, :M].astype(jnp.float32) * scale + shift   # (2, C_half, M)
    out = out.reshape(2, C_half, N, Ho, Wo)
    out = jnp.transpose(out, (2, 0, 1, 3, 4)).reshape(N, C_out, Ho, Wo)
    # TODO(synk): BN running_mean/running_var/num_batches_tracked module-state
    # updates are not reproduced (forward value matches PyTorch train mode).
    return out


def _reference(x_nchw, conv_w, gamma, beta):
    # pure-JAX reference mirroring the PyTorch forward (train-mode BN)
    x = jnp.maximum(x_nchw, 0.0)
    conv = lambda inp: lax.conv_general_dilated(
        inp, conv_w, window_strides=(2, 2), padding="VALID",
        dimension_numbers=("NCHW", "OIHW", "NCHW"))
    out = jnp.concatenate([conv(x), conv(x[:, :, 1:, 1:])], axis=1)
    mean = jnp.mean(out, axis=(0, 2, 3), keepdims=True)
    var = jnp.mean((out - mean) ** 2, axis=(0, 2, 3), keepdims=True)
    out = (out - mean) * lax.rsqrt(var + BN_EPS)
    return out * gamma.reshape(1, -1, 1, 1) + beta.reshape(1, -1, 1, 1)


if __name__ == "__main__":
    key = jax.random.PRNGKey(0)
    k_x, k_w = jax.random.split(key)

    N, C_in, H, W = 2, 4, 16, 16
    C_out = 8  # must be even

    x = jax.random.normal(k_x, (N, C_in, H, W), jnp.float32)
    conv_w = 0.1 * jax.random.normal(k_w, (C_out // 2, C_in, 1, 1), jnp.float32)
    gamma = jnp.ones((C_out,), jnp.float32)   # BN affine defaults
    beta = jnp.zeros((C_out,), jnp.float32)

    ref = _reference(x, conv_w, gamma, beta)

    # f32-storage path: tight check of the kernel logic.
    out_f32 = jax.block_until_ready(
        factorized_reduce2(x, conv_w, gamma, beta, storage_dtype=jnp.float32))
    assert out_f32.shape == (N, C_out, H // 2, W // 2), out_f32.shape
    assert jnp.allclose(out_f32, ref, atol=1e-3, rtol=1e-3)

    # default bf16-storage path (production config): looser tolerance for the
    # bf16 rounding of the activations and of the intermediate conv output.
    out = jax.block_until_ready(factorized_reduce2(x, conv_w, gamma, beta))
    assert out.shape == (N, C_out, H // 2, W // 2), out.shape
    assert jnp.allclose(out, ref, atol=5e-2, rtol=5e-2)

    print("KERNEL_OK")
</pallas_src>

<mosaic_0001>
module attributes {stable_mosaic.version = 11 : i64} {
  func.func @_conv_stats_kernel(%arg0: i32, %arg1: i32, %arg2: memref<1x4x128xf32, #tpu.memory_space<vmem>>, %arg3: memref<4x4xf32, #tpu.memory_space<vmem>>, %arg4: memref<1x4x128xf32, #tpu.memory_space<vmem>>, %arg5: memref<1x4x1xf32, #tpu.memory_space<vmem>>, %arg6: memref<1x4x1xf32, #tpu.memory_space<vmem>>) attributes {dimension_semantics = [#tpu.dimension_semantics<parallel>, #tpu.dimension_semantics<arbitrary>], iteration_bounds = array<i64: 2, 1>, scalar_prefetch = 0 : i64, scratch_operands = 0 : i64, tpu.core_type = #tpu.core_type<tc>, window_params = [{transform_indices = @transform_0, window_bounds = array<i64: 1, 4, 128>}, {pipeline_mode = #tpu.pipeline_mode<synchronous>, transform_indices = @transform_1, window_bounds = array<i64: 4, 4>}, {transform_indices = @transform_2, window_bounds = array<i64: 1, 4, 128>}, {transform_indices = @transform_3, window_bounds = array<i64: 1, 4, 1>}, {transform_indices = @transform_4, window_bounds = array<i64: 1, 4, 1>}]} {
    %c0_i32 = arith.constant 0 : i32
    %0 = arith.cmpi eq, %arg1, %c0_i32 : i32
    %1 = arith.extui %0 : i1 to i32
    %c0_i32_0 = arith.constant 0 : i32
    %2 = arith.cmpi ne, %1, %c0_i32_0 : i32
    scf.if %2 {
      %cst_23 = arith.constant 0.000000e+00 : f32
      %29 = vector.broadcast %cst_23 : f32 to vector<1x4x1xf32>
      %c0_24 = arith.constant 0 : index
      %c0_25 = arith.constant 0 : index
      %c0_26 = arith.constant 0 : index
      %30 = vector.load %arg5[%c0_24, %c0_25, %c0_26] : memref<1x4x1xf32, #tpu.memory_space<vmem>>, vector<1x4x1xf32>
      tpu.vector_store %arg5[%c0_24, %c0_25, %c0_26], %29 {strides = array<i32>} : memref<1x4x1xf32, #tpu.memory_space<vmem>>, vector<1x4x1xf32>,
      %cst_27 = arith.constant 0.000000e+00 : f32
      %31 = vector.broadcast %cst_27 : f32 to vector<1x4x1xf32>
      %c0_28 = arith.constant 0 : index
      %c0_29 = arith.constant 0 : index
      %c0_30 = arith.constant 0 : index
      %32 = vector.load %arg6[%c0_28, %c0_29, %c0_30] : memref<1x4x1xf32, #tpu.memory_space<vmem>>, vector<1x4x1xf32>
      tpu.vector_store %arg6[%c0_28, %c0_29, %c0_30], %31 {strides = array<i32>} : memref<1x4x1xf32, #tpu.memory_space<vmem>>, vector<1x4x1xf32>,
    } else {
    }
    %c0 = arith.constant 0 : index
    %c0_1 = arith.constant 0 : index
    %c0_2 = arith.constant 0 : index
    %3 = vector.load %arg2[%c0, %c0_1, %c0_2] : memref<1x4x128xf32, #tpu.memory_space<vmem>>, vector<1x4x128xf32>
    %4 = vector.shape_cast %3 : vector<1x4x128xf32> to vector<4x128xf32>
    %cst = arith.constant 0.000000e+00 : f32
    %5 = vector.broadcast %cst : f32 to vector<4x128xf32>
    %6 = arith.maximumf %4, %5 : vector<4x128xf32>
    %c0_3 = arith.constant 0 : index
    %c0_4 = arith.constant 0 : index
    %7 = vector.load %arg3[%c0_3, %c0_4] : memref<4x4xf32, #tpu.memory_space<vmem>>, vector<4x4xf32>
    %cst_5 = arith.constant dense<0.000000e+00> : vector<4x128xf32>
    %8 = tpu.matmul %7, %6, %cst_5 {dimension_numbers = #tpu.dot_dimension_numbers<[1], [0], [0], [1], [0, 0, 1, 1], [], []>} : vector<4x4xf32>, vector<4x128xf32>, vector<4x128xf32> -> vector<4x128xf32>
    %c0_6 = arith.constant 0 : index
    %c0_7 = arith.constant 0 : index
    %c0_8 = arith.constant 0 : index
    %9 = vector.load %arg4[%c0_6, %c0_7, %c0_8] : memref<1x4x128xf32, #tpu.memory_space<vmem>>, vector<1x4x128xf32>
    %10 = vector.shape_cast %9 : vector<1x4x128xf32> to vector<4x128xf32>
    %11 = vector.shape_cast %8 : vector<4x128xf32> to vector<1x4x128xf32>
    tpu.vector_store %arg4[%c0_6, %c0_7, %c0_8], %11 {strides = array<i32>} : memref<1x4x128xf32, #tpu.memory_space<vmem>>, vector<1x4x128xf32>,
    %c0_9 = arith.constant 0 : index
    %c0_10 = arith.constant 0 : index
    %c0_11 = arith.constant 0 : index
    %12 = vector.load %arg5[%c0_9, %c0_10, %c0_11] : memref<1x4x1xf32, #tpu.memory_space<vmem>>, vector<1x4x1xf32>
    %13 = vector.shape_cast %12 : vector<1x4x1xf32> to vector<4x1xf32>
    %cst_12 = arith.constant dense<0.000000e+00> : vector<4xf32>
    %14 = vector.multi_reduction <add>, %8, %cst_12 [1] : vector<4x128xf32> to vector<4xf32>
    %15 = vector.shape_cast %14 : vector<4xf32> to vector<4x1xf32>
    %16 = arith.addf %13, %15 : vector<4x1xf32>
    %c0_13 = arith.constant 0 : index
    %c0_14 = arith.constant 0 : index
    %c0_15 = arith.constant 0 : index
    %17 = vector.load %arg5[%c0_13, %c0_14, %c0_15] : memref<1x4x1xf32, #tpu.memory_space<vmem>>, vector<1x4x1xf32>
    %18 = vector.shape_cast %17 : vector<1x4x1xf32> to vector<4x1xf32>
    %19 = vector.shape_cast %16 : vector<4x1xf32> to vector<1x4x1xf32>
    tpu.vector_store %arg5[%c0_13, %c0_14, %c0_15], %19 {strides = array<i32>} : memref<1x4x1xf32, #tpu.memory_space<vmem>>, vector<1x4x1xf32>,
    %c0_16 = arith.constant 0 : index
    %c0_17 = arith.constant 0 : index
    %c0_18 = arith.constant 0 : index
    %20 = vector.load %arg6[%c0_16, %c0_17, %c0_18] : memref<1x4x1xf32, #tpu.memory_space<vmem>>, vector<1x4x1xf32>
    %21 = vector.shape_cast %20 : vector<1x4x1xf32> to vector<4x1xf32>
    %22 = arith.mulf %8, %8 : vector<4x128xf32>
    %cst_19 = arith.constant dense<0.000000e+00> : vector<4xf32>
    %23 = vector.multi_reduction <add>, %22, %cst_19 [1] : vector<4x128xf32> to vector<4xf32>
    %24 = vector.shape_cast %23 : vector<4xf32> to vector<4x1xf32>
    %25 = arith.addf %21, %24 : vector<4x1xf32>
    %c0_20 = arith.constant 0 : index
    %c0_21 = arith.constant 0 : index
    %c0_22 = arith.constant 0 : index
    %26 = vector.load %arg6[%c0_20, %c0_21, %c0_22] : memref<1x4x1xf32, #tpu.memory_space<vmem>>, vector<1x4x1xf32>
    %27 = vector.shape_cast %26 : vector<1x4x1xf32> to vector<4x1xf32>
    %28 = vector.shape_cast %25 : vector<4x1xf32> to vector<1x4x1xf32>
    tpu.vector_store %arg6[%c0_20, %c0_21, %c0_22], %28 {strides = array<i32>} : memref<1x4x1xf32, #tpu.memory_space<vmem>>, vector<1x4x1xf32>,
    return
  }
  func.func @transform_0(%arg0: i32, %arg1: i32) -> (i32, i32, i32) {
    %c0_i32 = arith.constant 0 : i32
    %c0_i32_0 = arith.constant 0 : i32
    return %arg0, %c0_i32, %arg1 : i32, i32, i32
  }
  func.func @transform_1(%arg0: i32, %arg1: i32) -> (i32, i32) {
    %c0_i32 = arith.constant 0 : i32
    %c0_i32_0 = arith.constant 0 : i32
    %c0_i32_1 = arith.constant 0 : i32
    return %c0_i32, %c0_i32_0 : i32, i32
  }
  func.func @transform_2(%arg0: i32, %arg1: i32) -> (i32, i32, i32) {
    %c0_i32 = arith.constant 0 : i32
    %c0_i32_0 = arith.constant 0 : i32
    return %arg0, %c0_i32, %arg1 : i32, i32, i32
  }
  func.func @transform_3(%arg0: i32, %arg1: i32) -> (i32, i32, i32) {
    %c0_i32 = arith.constant 0 : i32
    %c0_i32_0 = arith.constant 0 : i32
    %c0_i32_1 = arith.constant 0 : i32
    return %arg0, %c0_i32, %c0_i32_0 : i32, i32, i32
  }
  func.func @transform_4(%arg0: i32, %arg1: i32) -> (i32, i32, i32) {
    %c0_i32 = arith.constant 0 : i32
    %c0_i32_0 = arith.constant 0 : i32
    %c0_i32_1 = arith.constant 0 : i32
    return %arg0, %c0_i32, %c0_i32_0 : i32, i32, i32
  }
}

</mosaic_0001>

<bundles_post_ra>
// kernel: tpu_custom_call.1
= control target key start
LH: loop header
LB: loop body
LE: loop exit
PB: predicated region body
PF: predicated region fallthrough
CT: control target
= control target key end

     0   :  { %10 = vsyncpa [#allocation3], 0  ;;  %s1046_s0 = inlined_call_operand.hbm [shape: f32[2,4,128], index: 0, kind: input, shape index: {}]   ;;  %s1047_s1 = inlined_call_operand.hbm [shape: f32[4,4], index: 1, kind: input, shape index: {}]   ;;  %s1048_s2 = inlined_call_operand.hbm [shape: f32[2,4,128], index: 2, kind: output, shape index: {0}]   ;;  %s1049_s3 = inlined_call_operand.vmem [shape: f32[2,4,1], index: 3, kind: output, shape index: {1}]   ;;  %s1050_s4 = inlined_call_operand.vmem [shape: f32[2,4,1], index: 4, kind: output, shape index: {2}]  }
   0x1   :  { %12 = vsyncpa [#allocation3 + $0x1], 0 }
   0x2   :  { %13 = vsyncpa [#allocation6], 0 }
   0x3   :  { %14 = vsyncpa [#allocation4], 0 }
   0x4   :  { %16 = vsyncpa [#allocation4 + $0x1], 0  ;;  %s811_s15 = smov 0   ;;  %s813_s16 = smov 0  }
   0x5   :  { %s815_s17 = smov 0   ;;  %s817_s18 = smov 0  }
   0x6   :  { %s819_s19 = smov 0   ;;  %s821_s20 = smov 0  }
   0x7 LB: > { %s534_s21 = sadd.s32 4294967295, %s779_s20   ;;  %s535_s22 = sadd.s32 4294967294, %s779_s20   ;;  %s779_s20 = sphi %s821_s20, %s22_s20   ;;  %s775_s19 = sphi %s819_s19, %s1075_s19   ;;  %s771_s18 = sphi %s817_s18, %s1074_s18   ;;  %s767_s17 = sphi %s815_s17, %s1073_s17   ;;  %s763_s16 = sphi %s813_s16, %s1072_s16   ;;  %s759_s15 = sphi %s811_s15, %s1071_s15  }
   0x8   : > { %p56_p0 = scmp.ne.s32.totalorder %s763_s16, %s759_s15  ;;  %p845_p1 = scmp.eq.s32.totalorder %s534_s21, 0 }
   0x9   : > { %p849_p2 = scmp.eq.s32.totalorder %s534_s21, 1  ;;  %p109_p3 = scmp.eq.s32.totalorder %s535_s22, 1 }
   0xa   : > { %s1055_s23 = scalar_select %p845_p1, 1, 0 }
   0xb   : > { %s1056_s24 = scalar_select %p849_p2, 1, 0 }
   0xc   : > { %p855_p4 = por %p845_p1, %p56_p0  ;;  %p536_p5 = scmp.ge.s32.totalorder %s779_s20, 1 }
   0xd   : > { %p860_p6 = por %p109_p3, %p56_p0  ;;  %p168_p7 = scmp.lt.s32.totalorder %s779_s20, 3 }
   0xe   : > { %s1057_s25 = scalar_select %p855_p4, 1, 0 }
   0xf   : > { %s1058_s26 = scalar_select %p860_p6, 1, 0 }
  0x10   : > { %p865_p8 = pnand %p536_p5, %p168_p7  ;;  %s781_s28 = smov [#allocation5]  }
  0x11   : > { %s181_s29 = sshll.u32 %s781_s28, 4  ;;  %s34_s5 = sadd.s32 1, %s775_s19  ;;  %s182_s29 = int_to_ptr.vmem [resolvable:$true] %s181_s29 }
  0x12   : > { %s1059_s27 = scalar_select %p865_p8, 1, 0 }
  0x13   : > { %p568_p10 = pneg %p865_p8  ;;  %s43_s6 = sadd.s32 1, %s767_s17 }
  0x14   : > { %p880_p12 = scmp.ge.s32.totalorder %s34_s5, 2  ;;  %s635_s10 = scalar_lea.hbm %s1047_s1, 64 }
  0x15   : > { %p874_p11 = pnand %p568_p10, %p845_p1  ;;  %p636_p13 = scmp.ne.s32.totalorder %s1047_s1, %s635_s10 }
  0x16   : > { %s1061_s7 = scalar_select %p880_p12, 1, 0 }
  0x17   : > { %p637_p0 = pneg %p874_p11  ;;  %p642_p7 = scmp.lt.u32.totalorder %s635_s10, %s1047_s1 }
  0x19   : > { %p638_p3 = pnand %p637_p0, %p636_p13 }
  0x1b   : > { %p639_p5 = pneg %p638_p3 }
  0x1d   : > { %p644_p10 = pnand %p642_p7, %p639_p5 }
  0x1f   : > { %647 = shalt.err (!%p644_p10)
}
  0x20   : > { %s648_s21 = scalar_lea.vmem %s182_s29, 64  ;;  %p656_p4 = scmp.lt.s32.totalorder %s182_s29, %s182_s29 }
  0x21   : > { %p649_p9 = scmp.ne.s32.totalorder %s182_s29, %s648_s21  ;;  %p657_p8 = scmp.lt.s32.totalorder %s648_s21, %s648_s21 }
  0x23   : > { %p651_p6 = pnand %p649_p9, %p637_p0  ;;  %p658_p2 = por %p657_p8, %p656_p4 }
  0x25   : > { %p652_p1 = pneg %p651_p6 }
  0x27   : > { %p659_p12 = pnand %p658_p2, %p652_p1 }
  0x29   : > { %662 = shalt.err (!%p659_p12)
}
  0x2a   : > { %571 = dma.hbm_to_vmem [thread:$0]  (!%p874_p11), %s1047_s1, 64, %s182_s29, [#allocation6]  }
  0x2b   : > { %p1062_p4 = scmp.ne.s32.totalorder %s1061_s7, 0  ;;  %p50_p1 = scmp.ne.s32.totalorder %s767_s17, %s763_s16 }
  0x2c   : > { %p51_p2 = scmp.eq.s32.totalorder %s779_s20, 0  ;;  %p581_p6 = scmp.lt.s32.totalorder %s779_s20, 2 }
  0x2d   : > { %s1077_s5 = smov (%p1062_p4, %s34_s5), 0  ;;  %p1063_p12 = scmp.ne.s32.totalorder %s1056_s24, 0 }
  0x2e   : > { %s38_s30 = ssub.s32 %s775_s19, %s1077_s5  ;;  %p52_p9 = por %p51_p2, %p50_p1 }
  0x2f   : > { %p41_p8 = scmp.eq.s32.totalorder %s38_s30, 0  ;;  %p912_p13 = por %p1063_p12, %p50_p1 }
  0x30   : > { %s192_s9 = sand.u32 1, %s767_s17   ;;  %s540_s7 = sshll.u32 %s775_s19, 6 }
  0x31   : > { %s920_s10 = scalar_select %p41_p8, %s767_s17, %s43_s6  }
  0x32   : > { %s539_s29 = sshll.u32 %s192_s9, 2  ;;  %s926_s13 = scalar_lea.hbm %s1046_s0, %s540_s7 }
  0x33   : > { %s196_s24 = scalar_lea.vmem [#allocation2], %s539_s29  ;;  %p930_p11 = pnand %p581_p6, %p52_p9 }
  0x34   : > { %s204_s14 = sshll.u32 %s196_s24, 4  ;;  %s193_s6 = scalar_lea.sflag [#allocation3], %s192_s9  ;;  %s928_s14 = int_to_ptr.vmem [resolvable:$true] %s204_s14 }
  0x35   : > { %s663_s22 = scalar_lea.hbm %s926_s13, 64  ;;  %p665_p3 = pneg %p930_p11 }
  0x36   : > { %p664_p0 = scmp.ne.s32.totalorder %s926_s13, %s663_s22  ;;  %s668_s29 = scalar_lea.hbm %s1046_s0, 128 }
  0x37   : > { %p669_p10 = scmp.lt.u32.totalorder %s926_s13, %s1046_s0  ;;  %p670_p4 = scmp.lt.u32.totalorder %s668_s29, %s663_s22 }
  0x38   : > { %p666_p5 = pnand %p665_p3, %p664_p0  ;;  %p672_p2 = scmp.lt.u32.totalorder %s663_s22, %s926_s13 }
  0x39   : > { %p671_p1 = por %p670_p4, %p669_p10 }
  0x3a   : > { %p667_p7 = pneg %p666_p5 }
  0x3b   : > { %p673_p6 = por %p672_p2, %p671_p1 }
  0x3d   : > { %p674_p8 = pnand %p673_p6, %p667_p7 }
  0x3f   : > { %677 = shalt.err (!%p674_p8)
}
  0x40   : > { %s678_s9 = scalar_lea.vmem %s928_s14, 64  ;;  %s782_s12 = smov [#allocation2]  }
  0x41   : > { %p679_p9 = scmp.ne.s32.totalorder %s928_s14, %s678_s9  ;;  %s683_s24 = sshll.u32 %s782_s12, 4  ;;  %s684_s24 = int_to_ptr.vmem [resolvable:$false] %s683_s24 }
  0x42   : > { %s685_s28 = scalar_lea.vmem %s684_s24, 128  ;;  %p686_p5 = scmp.lt.s32.totalorder %s928_s14, %s684_s24 }
  0x43   : > { %p681_p12 = pnand %p679_p9, %p665_p3  ;;  %p687_p10 = scmp.lt.s32.totalorder %s685_s28, %s678_s9 }
  0x45   : > { %p682_p0 = pneg %p681_p12  ;;  %p688_p4 = por %p687_p10, %p686_p5 }
  0x47   : > { %p689_p1 = pnand %p688_p4, %p682_p0 }
  0x49   : > { %692 = shalt.err (!%p689_p1)
}
  0x4a   : > { %575 = dma.hbm_to_vmem [thread:$0]  (!%p930_p11), %s926_s13, 64, %s928_s14, %s193_s6  }
  0x4b   : > { %p1066_p7 = scmp.ne.s32.totalorder %s1059_s27, 0 }
  0x4c   : > { %s962_s22 = sand.u32 (!%p1066_p7), 1, %s763_s16   ;;  %p1067_p3 = scmp.ne.s32.totalorder (!%p1066_p7), %s1057_s25, 0 }
  0x4d   : > { %213 = sbr.rel (%p1066_p7) target bundleno = 454 (0x1c6), region = 28  ;;  %s542_s30 = sshll.u32 (!%p1066_p7), %s962_s22, 2 }
  0x4e   : > { %s216_s29 = scalar_lea.sflag (!%p1066_p7), [#allocation3], %s962_s22  ;;  %s219_s7 = scalar_lea.vmem (!%p1066_p7), [#allocation2], %s542_s30 }
  0x54   : > { %746 = dma.done.wait (%p1067_p3), %s216_s29, 64  }
  0x55   : > { %748 = vsyncadd (%p1067_p3), %s216_s29, 4294967232  ;;  %p1068_p2 = scmp.ne.s32.totalorder %s1055_s23, 0 }
  0x57   : > { %750 = dma.done.wait (%p1068_p2), [#allocation6], 64  }
  0x58   : > { %752 = vsyncadd (%p1068_p2), [#allocation6], 4294967232  ;;  %v783_v0 = vmov 0.0   ;;  %vm784_vm0 = vmmov 0   ;;  %v271_v1 = vld [vmem:[%s219_s7] sm:$0xf] }
  0x59   : > { %555 = vmatprep.subr.mxu0 %v783_v0  ;;  %557 = vmatprep.mubr.msk.f32.mxu0 %vm784_vm0, %v783_v0  ;;  %vm278_vm1 = vcmask 1043456   ;;  %v272_v2 = vmax.f32 %v271_v1, 0.0  ;;  %v273_v3 = vld [vmem:[#allocation5] sm:$0xf]  ;;  %vm274_vm2 = vcmask 31744   ;;  %p256_p11 = scmp.lt.s32.totalorder %s771_s18, 1 }
  0x5a   : > { %vm268_vm3 = vcmask 3072   ;;  %s243_s21 = scalar_lea.vmem [#allocation7], %s542_s30  ;;  %s550_s12 = sshll.u32 %s771_s18, 6 }
  0x5b   : > { %556 = vmatpush3.msk.msra.mxu0 %vm278_vm1, %v272_v2  ;;  %s257_s25 = scalar_select %p256_p11, %s771_s18, 1 }
  0x5c   : > { %558 = vmatmul.mubr.msk.f32.vlgmr.msra.gmra.mrb[0].mxu0 %vm274_vm2, %v273_v3  ;;  %s390_s24 = sshll.u32 %s243_s21, 4  ;;  %s997_s29 = scalar_lea.hbm %s1048_s2, %s550_s12  ;;  %s391_s24 = int_to_ptr.vmem [resolvable:$true] %s390_s24 }
  0x5d   : > { %s545_s23 = sshll.u32 %s257_s25, 2  ;;  %s368_s7 = scalar_lea.sflag [#allocation4], %s962_s22 }
  0x5e   : > { %s980_s14 = scalar_lea.vmem %s1049_s3, %s545_s23  ;;  %s989_s9 = scalar_lea.vmem %s1050_s4, %s545_s23 }
  0x5f   : > { %269 = vst.msk [vmem:[%s980_s14] sm:$0xf] %vm268_vm3, %v783_v0  ;;  %270 = vst.msk [vmem:[%s989_s9] sm:$0xf] %vm268_vm3, %v783_v0  ;;  %s693_s25 = scalar_lea.vmem %s391_s24, 64  ;;  %s785_s27 = smov [#allocation7]  }
  0x60   : > { %p694_p6 = scmp.ne.s32.totalorder %s391_s24, %s693_s25  ;;  %s697_s23 = sshll.u32 %s785_s27, 4  ;;  %s698_s23 = int_to_ptr.vmem [resolvable:$false] %s697_s23 }
  0x61   : > { %s699_s13 = scalar_lea.vmem %s698_s23, 128  ;;  %p700_p12 = scmp.lt.s32.totalorder %s391_s24, %s698_s23 }
  0x62   : > { %p695_p8 = pnand %p694_p6, %p912_p13  ;;  %p701_p0 = scmp.lt.s32.totalorder %s699_s13, %s693_s25 }
  0x64   : > { %p696_p9 = pneg %p695_p8  ;;  %p702_p5 = por %p701_p0, %p700_p12 }
  0x66   : > { %p703_p10 = pnand %p702_p5, %p696_p9 }
 0x12f   : > { %v348_v4 = vpop.f32.mrb[0].mxu0 }
 0x130   : > { %352 = vst [vmem:[%s243_s21] sm:$0xf] %v348_v4  ;;  %v559_v5 = vpop.f32.mrb[1].mxu0  ;;  %v354_v6 = vsel %vm278_vm1, %v348_v4, 0.0  ;;  %v361_v7 = vmul.f32 %v348_v4, %v348_v4 }
 0x131   : > { %355 = vadd.xlane.f32.xlu0 %v354_v6 }
 0x132   : > { %v362_v8 = vsel %vm278_vm1, %v361_v7, 0.0 }
 0x135   : > { %363 = vadd.xlane.f32.xlu0 %v362_v8 }
 0x136   : > { %706 = shalt.err (!%p703_p10)
}
 0x137   : > { %s707_s18 = scalar_lea.hbm %s997_s29, 64  ;;  %s711_s6 = scalar_lea.hbm %s1048_s2, 128 }
 0x138   : > { %p708_p4 = scmp.ne.s32.totalorder %s997_s29, %s707_s18  ;;  %p712_p3 = scmp.lt.u32.totalorder %s997_s29, %s1048_s2 }
 0x139   : > { %p713_p2 = scmp.lt.u32.totalorder %s711_s6, %s707_s18  ;;  %p715_p6 = scmp.lt.u32.totalorder %s707_s18, %s997_s29 }
 0x13a   : > { %p709_p1 = pnand %p708_p4, %p912_p13 }
 0x13b   : > { %p714_p11 = por %p713_p2, %p712_p3 }
 0x13c   : > { %p710_p7 = pneg %p709_p1 }
 0x13d   : > { %p716_p8 = por %p715_p6, %p714_p11 }
 0x13f   : > { %p717_p9 = pnand %p716_p8, %p710_p7 }
 0x141   : > { %720 = shalt.err (!%p717_p9)
}
 0x142   : > { %566 = dma.vmem_to_hbm [thread:$0]  (%p912_p13), %s391_s24, 64, %s997_s29, %s368_s7   ;;  %v353_v9 = vld [vmem:[%s980_s14] sm:$0xf] }
 0x143   : > { %v360_v12 = vld [vmem:[%s989_s9] sm:$0xf] }
 0x1be   : > { %v356_v10 = vpop.xlane.xlu0 %355 }
 0x1bf   : > { %v357_v11 = vadd.f32 %v356_v10, %v353_v9 }
 0x1c1   : > { %359 = vst.msk [vmem:[%s980_s14] sm:$0xf] %vm268_vm3, %v357_v11 }
 0x1c2   : > { %v364_v13 = vpop.xlane.xlu0 %363 }
 0x1c3   : > { %v365_v14 = vadd.f32 %v364_v13, %v360_v12 }
 0x1c5   : > { %366 = vst.msk [vmem:[%s989_s9] sm:$0xf] %vm268_vm3, %v365_v14 }
 0x1c6 PF: > { %s408_s8 = sand.u32 1, %s759_s15   ;;  %p1069_p12 = scmp.ne.s32.totalorder %s1058_s26, 0 }
 0x1c7   : > { %p1070_p0 = scmp.ge.s32.totalorder %s779_s20, 2  ;;  %s409_s28 = scalar_lea.sflag [#allocation4], %s408_s8 }
 0x1c9   : > { %p577_p5 = pnand %p1070_p0, %p1069_p12 }
 0x1cb   : > { %754 = dma.done.wait (!%p577_p5), %s409_s28, 64  }
 0x1cc   : > { %756 = vsyncadd (!%p577_p5), %s409_s28, 4294967232  ;;  %s22_s20 = sadd.s32 1, %s779_s20   ;;  %s1071_s15 = smov %s763_s16 }
 0x1cd   : > { %p19_p13 = scmp.ge.s32.totalorder %s22_s20, 4   ;;  %s1072_s16 = smov %s767_s17 }
 0x1ce   : > { %s1073_s17 = smov %s920_s10  ;;  %s1074_s18 = smov %s775_s19 }
 0x1cf   : > { %s1075_s19 = smov %s1077_s5  ;;  %21 = sbr.rel (!%p19_p13) target bundleno = 7 (0x7), region = 105 }
 0x1d6   :  { %428 = vsyncpa [#allocation3], 1 }
 0x1d7   :  { %430 = vsyncpa [#allocation3 + $0x1], 1 }
 0x1d8   :  { %431 = vsyncpa [#allocation6], 1 }
 0x1d9   :  { %432 = vsyncpa [#allocation4], 1 }
 0x1da   :  { %434 = vsyncpa [#allocation4 + $0x1], 1 }

</bundles_post_ra>
